<compile_context>
chip_gen: v5e
topology: v5e:2x2
jax: 0.10.0
libtpu: 0.0.40
codegen_flags: <defaults>
</compile_context>

<pallas_src>
import functools

import jax
import jax.numpy as jnp
from jax.experimental import pallas as pl
from jax.experimental.pallas import tpu as pltpu


def _round_up(x, m):
    return ((x + m - 1) // m) * m


def prepare_params(w1, b1, w2, b2, *, use_bf16_matmul=True):
    """One-time weight preparation (do this OUTSIDE the sampling/training loop).

    Pads w2/b2 output columns up to a multiple of 128 (lane-dense fused output)
    and casts the weight matrices to the MXU matmul dtype. Biases stay float32.
    """
    d_out = w2.shape[1]
    pad_out = _round_up(max(d_out, 128), 128)
    if pad_out != d_out:
        w2 = jnp.pad(w2, ((0, 0), (0, pad_out - d_out)))
        b2 = jnp.pad(b2, ((0, 0), (0, pad_out - d_out)))
    mdt = jnp.bfloat16 if use_bf16_matmul else jnp.float32
    return (w1.astype(mdt), b1.astype(jnp.float32),
            w2.astype(mdt), b2.astype(jnp.float32))


def _make_kernel(n2, d_out, pad_out):
    """Kernel closure. n2 = N^2, d_out = 4*N^2, pad_out = d_out rounded to 128."""
    pad = pad_out - d_out

    def kernel(state_ref, w1_ref, b1_ref, w2_ref, b2_ref, out_ref):
        s = state_ref[...]                                   # (TB, 2*n2) f32
        mdt = w1_ref.dtype                                   # matmul dtype (bf16/f32)

        # --- net: Linear -> LeakyReLU(0.01) -> Linear (MXU, f32 accumulate) ---
        h = jnp.dot(s.astype(mdt), w1_ref[...],
                    preferred_element_type=jnp.float32) + b1_ref[...]
        h = jnp.maximum(h, 0.01 * h)                         # LeakyReLU, f32 VPU
        logits = jnp.dot(h.astype(mdt), w2_ref[...],
                         preferred_element_type=jnp.float32) + b2_ref[...]
        # logits: (TB, pad_out); lanes [0, 4*n2) real, rest zero (padded w2/b2).

        # --- fused masking: out = logits*mult + (1 - mult) * (-100) ---
        #   PF lanes [0, 2n2):   mult = 1 - (s[:, :n2] + s[:, n2:]) (duplicated)
        #   PB lanes [2n2, 4n2): mult = s
        #   pad lanes:           mult = 0  -> value -100, sliced off by the wrapper
        u = s[:, :n2] + s[:, n2:]                            # (TB, n2) "unavailable"
        pieces = [1.0 - u, 1.0 - u, s]
        if pad:
            pieces.append(jnp.zeros((s.shape[0], pad), jnp.float32))
        mult = jnp.concatenate(pieces, axis=-1)              # (TB, pad_out)
        out_ref[...] = logits * mult + (1.0 - mult) * (-100.0)   # unmasked 128-lane store

    return kernel


def _resident_spec(shape):
    """VMEM-resident constant block: same block every step, single buffer."""
    return pl.BlockSpec(shape, lambda i: (0, 0), pipeline_mode=pl.Buffered(1))


@jax.jit
def ising_tb_flow_forward(state, w1, b1, w2, b2):
    """PF, PB = SimpleIsingTBFlowModel.forward(state).

    `w1, b1, w2, b2` must come from prepare_params() (padded + cast once).
    state: (B, 2*N^2) float32 with entries in {0, 1}.
    """
    B, D = state.shape                                       # D = 2*N^2
    n2 = D // 2
    d_out = 2 * D                                            # 4*N^2
    H = w1.shape[1]
    pad_out = w2.shape[1]
    assert pad_out % 128 == 0 and pad_out >= d_out, "run prepare_params() first"

    witem = jnp.dtype(w1.dtype).itemsize
    weight_bytes = (w1.size * witem + w2.size * witem + b1.size * 4 + b2.size * 4)

    # --- batch tile from a VMEM budget (not a hard-coded 128) -----------------
    # Streamed bytes per row (double-buffered f32 state in + f32 fused out) plus
    # an estimate of the per-row intermediate working set (h, logits).
    row_bytes = 2 * 4 * (D + pad_out)
    interm_per_row = 4 * (H + 2 * pad_out)
    budget = max((48 << 20) - weight_bytes, 1 << 20)         # stay under v7x 64 MiB
    tb_vmem = max(8, (budget // (row_bytes + interm_per_row)) // 8 * 8)
    half_b = _round_up(max(-(-B // 2), 8), 8)                # >= 2 steps for v7x's 2 TCs
    tb = max(8, min(tb_vmem, 2048, half_b))
    Bp = _round_up(B, tb)
    if Bp != B:
        state = jnp.pad(state, ((0, Bp - B), (0, 0)))
    grid = (Bp // tb,)

    vmem_limit = min(96 << 20,
                     weight_bytes + tb * (row_bytes + interm_per_row) + (16 << 20))

    cost = pl.CostEstimate(
        flops=2 * Bp * H * (D + pad_out),
        transcendentals=0,
        bytes_accessed=Bp * 4 * (D + pad_out) + weight_bytes,
    )

    kernel = _make_kernel(n2, d_out, pad_out)

    out = pl.pallas_call(
        kernel,
        out_shape=jax.ShapeDtypeStruct((Bp, pad_out), jnp.float32),
        grid_spec=pltpu.PrefetchScalarGridSpec(
            num_scalar_prefetch=0,
            grid=grid,
            in_specs=[
                pl.BlockSpec((tb, D), lambda i: (i, 0)),     # state: streamed per tile
                _resident_spec((D, H)),                      # w1: VMEM-resident, 1 buffer
                _resident_spec((1, H)),                      # b1
                _resident_spec((H, pad_out)),                # w2
                _resident_spec((1, pad_out)),                # b2
            ],
            out_specs=pl.BlockSpec((tb, pad_out), lambda i: (i, 0)),
        ),
        compiler_params=pltpu.CompilerParams(
            dimension_semantics=("parallel",),               # megacore / v7x 2-TC split
            vmem_limit_bytes=int(vmem_limit),
        ),
        cost_estimate=cost,
    )(state, w1, b1, w2, b2)

    # TODO(synk): for d_out <= 64 half the padded output lanes are dead writeback;
    # packing two batch rows per 128-lane output row would halve the output DMA.
    pf = out[:B, : 2 * n2]
    pb = out[:B, 2 * n2: 4 * n2]
    return pf, pb


def init_params(key, N, n_hidden):
    """Deterministic synthetic init matching torch.nn.Linear fan-in uniform bounds."""
    d_in = 2 * N * N
    d_out = 2 * 2 * N * N
    k1, k2, k3, k4 = jax.random.split(key, 4)
    bound1 = 1.0 / jnp.sqrt(d_in)
    bound2 = 1.0 / jnp.sqrt(n_hidden)
    w1 = jax.random.uniform(k1, (d_in, n_hidden), jnp.float32, -bound1, bound1)
    b1 = jax.random.uniform(k2, (1, n_hidden), jnp.float32, -bound1, bound1)
    w2 = jax.random.uniform(k3, (n_hidden, d_out), jnp.float32, -bound2, bound2)
    b2 = jax.random.uniform(k4, (1, d_out), jnp.float32, -bound2, bound2)
    return w1, b1, w2, b2


def reference_forward(state, w1, b1, w2, b2, N):
    """Pure-JAX reference (HIGHEST matmul precision so the f32 kernel path can be
    checked tightly without depending on the TPU default-precision matmul)."""
    hp = jax.lax.Precision.HIGHEST
    n2 = N * N
    h = jnp.dot(state, w1, precision=hp) + b1
    h = jnp.where(h > 0, h, 0.01 * h)
    logits = jnp.dot(h, w2, precision=hp) + b2
    unavail = jnp.concatenate([state[:, :n2] + state[:, n2:]] * 2, axis=-1)
    pf = logits[:, : 2 * n2] * (1 - unavail) + unavail * -100.0
    pb = logits[:, 2 * n2:] * state + (1 - state) * -100.0
    return pf, pb


if __name__ == "__main__":
    N = 4            # lattice side -> state dim = 2*N^2 = 32, logits dim = 4*N^2 = 64
    n_hidden = 32
    B = 256

    key = jax.random.PRNGKey(0)
    k_state, k_params = jax.random.split(key)

    # Binary one-hot-style state (values in {0, 1}), as the GFlowNet uses.
    state = jax.random.bernoulli(k_state, 0.3, (B, 2 * N * N)).astype(jnp.float32)
    w1, b1, w2, b2 = init_params(k_params, N, n_hidden)

    pf_ref, pb_ref = reference_forward(state, w1, b1, w2, b2, N)

    # 1) Default path: bf16 matmuls on the MXU (f32 accumulate / elementwise).
    params_bf16 = prepare_params(w1, b1, w2, b2, use_bf16_matmul=True)
    pf, pb = ising_tb_flow_forward(state, *params_bf16)
    jax.block_until_ready((pf, pb))
    assert pf.shape == (B, 2 * N * N) and pb.shape == (B, 2 * N * N)
    assert jnp.allclose(pf, pf_ref, atol=0.2, rtol=0.02)
    assert jnp.allclose(pb, pb_ref, atol=0.2, rtol=0.02)

    # 2) Ragged batch (exercises the batch-padding / small-tile path).
    pf2, pb2 = ising_tb_flow_forward(state[:10], *params_bf16)
    jax.block_until_ready((pf2, pb2))
    assert jnp.allclose(pf2, pf_ref[:10], atol=0.2, rtol=0.02)
    assert jnp.allclose(pb2, pb_ref[:10], atol=0.2, rtol=0.02)

    # 3) f32 matmul path (near-exact vs the HIGHEST-precision reference).
    params_f32 = prepare_params(w1, b1, w2, b2, use_bf16_matmul=False)
    pf3, pb3 = ising_tb_flow_forward(state, *params_f32)
    jax.block_until_ready((pf3, pb3))
    assert jnp.allclose(pf3, pf_ref, atol=1e-3, rtol=1e-3)
    assert jnp.allclose(pb3, pb_ref, atol=1e-3, rtol=1e-3)

    print("KERNEL_OK")
</pallas_src>

<mosaic_0001>
module attributes {stable_mosaic.version = 11 : i64} {
  func.func @kernel(%arg0: i32, %arg1: memref<128x32xf32, #tpu.memory_space<vmem>>, %arg2: memref<32x32xbf16, #tpu.memory_space<vmem>>, %arg3: memref<1x32xf32, #tpu.memory_space<vmem>>, %arg4: memref<32x128xbf16, #tpu.memory_space<vmem>>, %arg5: memref<1x128xf32, #tpu.memory_space<vmem>>, %arg6: memref<128x128xf32, #tpu.memory_space<vmem>>) attributes {dimension_semantics = [#tpu.dimension_semantics<parallel>], iteration_bounds = array<i64: 2>, scalar_prefetch = 0 : i64, scratch_operands = 0 : i64, tpu.core_type = #tpu.core_type<tc>, window_params = [{transform_indices = @transform_0, window_bounds = array<i64: 128, 32>}, {pipeline_mode = #tpu.pipeline_mode<synchronous>, transform_indices = @transform_1, window_bounds = array<i64: 32, 32>}, {pipeline_mode = #tpu.pipeline_mode<synchronous>, transform_indices = @transform_2, window_bounds = array<i64: 1, 32>}, {pipeline_mode = #tpu.pipeline_mode<synchronous>, transform_indices = @transform_3, window_bounds = array<i64: 32, 128>}, {pipeline_mode = #tpu.pipeline_mode<synchronous>, transform_indices = @transform_4, window_bounds = array<i64: 1, 128>}, {transform_indices = @transform_5, window_bounds = array<i64: 128, 128>}]} {
    %c0 = arith.constant 0 : index
    %c0_0 = arith.constant 0 : index
    %0 = vector.load %arg1[%c0, %c0_0] : memref<128x32xf32, #tpu.memory_space<vmem>>, vector<128x32xf32>
    %1 = arith.truncf %0 : vector<128x32xf32> to vector<128x32xbf16>
    %c0_1 = arith.constant 0 : index
    %c0_2 = arith.constant 0 : index
    %2 = vector.load %arg2[%c0_1, %c0_2] : memref<32x32xbf16, #tpu.memory_space<vmem>>, vector<32x32xbf16>
    %cst = arith.constant dense<0.000000e+00> : vector<128x32xf32>
    %3 = tpu.matmul %1, %2, %cst {dimension_numbers = #tpu.dot_dimension_numbers<[1], [0], [0], [1], [0, 0, 1, 1], [], []>} : vector<128x32xbf16>, vector<32x32xbf16>, vector<128x32xf32> -> vector<128x32xf32>
    %c0_3 = arith.constant 0 : index
    %c0_4 = arith.constant 0 : index
    %4 = vector.load %arg3[%c0_3, %c0_4] : memref<1x32xf32, #tpu.memory_space<vmem>>, vector<1x32xf32>
    %5 = vector.broadcast %4 : vector<1x32xf32> to vector<128x32xf32>
    %6 = arith.addf %3, %5 : vector<128x32xf32>
    %cst_5 = arith.constant 0.00999999977 : f32
    %7 = vector.broadcast %cst_5 : f32 to vector<128x32xf32>
    %8 = arith.mulf %7, %6 : vector<128x32xf32>
    %9 = arith.maximumf %6, %8 : vector<128x32xf32>
    %10 = arith.truncf %9 : vector<128x32xf32> to vector<128x32xbf16>
    %c0_6 = arith.constant 0 : index
    %c0_7 = arith.constant 0 : index
    %11 = vector.load %arg4[%c0_6, %c0_7] : memref<32x128xbf16, #tpu.memory_space<vmem>>, vector<32x128xbf16>
    %cst_8 = arith.constant dense<0.000000e+00> : vector<128x128xf32>
    %12 = tpu.matmul %10, %11, %cst_8 {dimension_numbers = #tpu.dot_dimension_numbers<[1], [0], [0], [1], [0, 0, 1, 1], [], []>} : vector<128x32xbf16>, vector<32x128xbf16>, vector<128x128xf32> -> vector<128x128xf32>
    %c0_9 = arith.constant 0 : index
    %c0_10 = arith.constant 0 : index
    %13 = vector.load %arg5[%c0_9, %c0_10] : memref<1x128xf32, #tpu.memory_space<vmem>>, vector<1x128xf32>
    %14 = vector.broadcast %13 : vector<1x128xf32> to vector<128x128xf32>
    %15 = arith.addf %12, %14 : vector<128x128xf32>
    %16 = vector.extract_strided_slice %0 {offsets = [0, 0], sizes = [128, 16], strides = [1, 1]} : vector<128x32xf32> to vector<128x16xf32>
    %17 = vector.extract_strided_slice %0 {offsets = [0, 16], sizes = [128, 16], strides = [1, 1]} : vector<128x32xf32> to vector<128x16xf32>
    %18 = arith.addf %16, %17 : vector<128x16xf32>
    %cst_11 = arith.constant 1.000000e+00 : f32
    %19 = vector.broadcast %cst_11 : f32 to vector<128x16xf32>
    %20 = arith.subf %19, %18 : vector<128x16xf32>
    %cst_12 = arith.constant 1.000000e+00 : f32
    %21 = vector.broadcast %cst_12 : f32 to vector<128x16xf32>
    %22 = arith.subf %21, %18 : vector<128x16xf32>
    %cst_13 = arith.constant 0.000000e+00 : f32
    %23 = vector.broadcast %cst_13 : f32 to vector<128x64xf32>
    %24 = tpu.concatenate %20, %22, %0, %23 in 1 : vector<128x16xf32>, vector<128x16xf32>, vector<128x32xf32>, vector<128x64xf32> -> vector<128x128xf32>
    %25 = arith.mulf %15, %24 : vector<128x128xf32>
    %cst_14 = arith.constant 1.000000e+00 : f32
    %26 = vector.broadcast %cst_14 : f32 to vector<128x128xf32>
    %27 = arith.subf %26, %24 : vector<128x128xf32>
    %cst_15 = arith.constant -1.000000e+02 : f32
    %28 = vector.broadcast %cst_15 : f32 to vector<128x128xf32>
    %29 = arith.mulf %27, %28 : vector<128x128xf32>
    %30 = arith.addf %25, %29 : vector<128x128xf32>
    %c0_16 = arith.constant 0 : index
    %c0_17 = arith.constant 0 : index
    %31 = vector.load %arg6[%c0_16, %c0_17] : memref<128x128xf32, #tpu.memory_space<vmem>>, vector<128x128xf32>
    tpu.vector_store %arg6[%c0_16, %c0_17], %30 {strides = array<i32>} : memref<128x128xf32, #tpu.memory_space<vmem>>, vector<128x128xf32>,
    return
  }
  func.func @transform_0(%arg0: i32) -> (i32, i32) {
    %c0_i32 = arith.constant 0 : i32
    %c0_i32_0 = arith.constant 0 : i32
    return %arg0, %c0_i32 : i32, i32
  }
  func.func @transform_1(%arg0: i32) -> (i32, i32) {
    %c0_i32 = arith.constant 0 : i32
    %c0_i32_0 = arith.constant 0 : i32
    %c0_i32_1 = arith.constant 0 : i32
    return %c0_i32, %c0_i32_0 : i32, i32
  }
  func.func @transform_2(%arg0: i32) -> (i32, i32) {
    %c0_i32 = arith.constant 0 : i32
    %c0_i32_0 = arith.constant 0 : i32
    %c0_i32_1 = arith.constant 0 : i32
    return %c0_i32, %c0_i32_0 : i32, i32
  }
  func.func @transform_3(%arg0: i32) -> (i32, i32) {
    %c0_i32 = arith.constant 0 : i32
    %c0_i32_0 = arith.constant 0 : i32
    %c0_i32_1 = arith.constant 0 : i32
    return %c0_i32, %c0_i32_0 : i32, i32
  }
  func.func @transform_4(%arg0: i32) -> (i32, i32) {
    %c0_i32 = arith.constant 0 : i32
    %c0_i32_0 = arith.constant 0 : i32
    %c0_i32_1 = arith.constant 0 : i32
    return %c0_i32, %c0_i32_0 : i32, i32
  }
  func.func @transform_5(%arg0: i32) -> (i32, i32) {
    %c0_i32 = arith.constant 0 : i32
    %c0_i32_0 = arith.constant 0 : i32
    return %arg0, %c0_i32 : i32, i32
  }
}

</mosaic_0001>

<bundles_post_ra>
// kernel: ising_tb_flow_forward.1
= control target key start
LH: loop header
LB: loop body
LE: loop exit
PB: predicated region body
PF: predicated region fallthrough
CT: control target
= control target key end

     0   :  { %s979_s18 = smov 0   ;;  %s1459_s0 = inlined_call_operand.vmem [shape: f32[256,32], index: 0, kind: input, shape index: {}]   ;;  %s1460_s1 = inlined_call_operand.vmem [shape: bf16[32,32], index: 1, kind: input, shape index: {}]   ;;  %s1461_s2 = inlined_call_operand.vmem [shape: f32[1,32], index: 2, kind: input, shape index: {}]   ;;  %s1462_s3 = inlined_call_operand.vmem [shape: bf16[32,128], index: 3, kind: input, shape index: {}]   ;;  %s1463_s4 = inlined_call_operand.vmem [shape: f32[1,128], index: 4, kind: input, shape index: {}]   ;;  %s1464_s5 = inlined_call_operand.vmem [shape: f32[256,128], index: 5, kind: output, shape index: {}]  }
   0x1 LB: > { %s874_s19 = sadd.s32 4294967295, %s944_s18   ;;  %p878_p0 = scmp.ge.s32.totalorder %s944_s18, 1  ;;  %s944_s18 = sphi %s979_s18, %s15_s18  }
   0x2   : > { %p188_p1 = scmp.lt.s32.totalorder %s944_s18, 3 }
   0x4   : > { %p189_p2 = pnand %p878_p0, %p188_p1 }
   0x5   : > { %s879_s22 = sshll.u32 (!%p189_p2), %s874_s19, 4  ;;  %s946_s29 = smov (!%p189_p2), 112  }
   0x6   : > { %192 = sbr.rel (%p189_p2) target bundleno = 362 (0x16a), region = 40  ;;  %p217_p3 = scmp.lt.s32.totalorder (!%p189_p2), %s879_s22, 31 }
   0x7   : > { %s947_s30 = smov (!%p189_p2), 32   ;;  %s948_s10 = smov (!%p189_p2), 16  }
   0xb   : > { %v918_v0 = vld [vmem:[%s1460_s1 + $0x8] sm:$0xff]  ;;  %v917_v1 = vld [vmem:[%s1460_s1] sm:$0xff]  ;;  %s1466_s22 = smov (!%p217_p3, %s879_s22), 31  ;;  %vm273_vm0 = vcmask 261120   ;;  %vm688_vm1 = vcmask 130048   ;;  %vm721_vm2 = vcmask 523264  }
   0xc   : > { %304 = vmatpush.bf16.msra.mxu0 %v918_v0  ;;  %921 = vmatpush.bf16.msra.mxu2 %v918_v0  ;;  %s880_s25 = sshll.u32 %s1466_s22, 3  ;;  %v920_v27 = vld [vmem:[%s1462_s3 + $0x8] sm:$0xff]  ;;  %v919_v28 = vld [vmem:[%s1462_s3] sm:$0xff] }
   0xd   : > { %s1001_s28 = scalar_lea.vmem %s1459_s0, %s880_s25  ;;  %437 = vmatpush.bf16.msra.mxu1 %v920_v27  ;;  %923 = vmatpush.bf16.msra.mxu3 %v920_v27  ;;  %v1183_v48 = vld [vmem:[%s1461_s2] ss:$0 sm:$0xff]  ;;  %s1337_s17 = scalar_lea.vmem %s1464_s5, %s880_s25 }
   0xe   : > { %v1004_v2 = vld [vmem:[%s1001_s28 + $0x10] sm:$0xff]  ;;  %v1007_v3 = vld [vmem:[%s1001_s28] sm:$0xff]  ;;  %v1010_v4 = vld [vmem:[%s1001_s28 + $0x8] sm:$0xff] }
   0xf   : > { %500 = vrot.lane.b32.xlu1 %v1004_v2, %s946_s29  ;;  %496 = vrot.lane.b32.xlu0 %v1007_v3, %s946_s29  ;;  %v245_v5 = vpack.c.bf16 %v1010_v4, %v1007_v3  ;;  %v1019_v6 = vld [vmem:[%s1001_s28 + $0x40] sm:$0xff]  ;;  %v1022_v7 = vld [vmem:[%s1001_s28 + $0x48] sm:$0xff] }
  0x10   : > { %305 = vmatpush.bf16.msra.mxu0 %v917_v1  ;;  %922 = vmatpush.bf16.msra.mxu2 %v917_v1  ;;  %v249_v8 = vpack.c.bf16 %v1022_v7, %v1019_v6  ;;  %v1028_v9 = vld [vmem:[%s1001_s28 + $0x20] sm:$0xff]  ;;  %v1034_v10 = vld [vmem:[%s1001_s28 + $0x18] sm:$0xff]  ;;  %v1041_v11 = vld [vmem:[%s1001_s28 + $0x28] sm:$0xff] }
  0x11   : > { %504 = vrot.lane.b32.xlu2 %v1028_v9, %s946_s29  ;;  %v1046_v12 = vld [vmem:[%s1001_s28 + $0x50] sm:$0xff]  ;;  %v1049_v13 = vld [vmem:[%s1001_s28 + $0x58] sm:$0xff]  ;;  %v246_v16 = vpack.c.bf16 %v1034_v10, %v1004_v2  ;;  %v1076_v18 = vld [vmem:[%s1001_s28 + $0x60] sm:$0xff]  ;;  %v247_v20 = vpack.c.bf16 %v1041_v11, %v1028_v9  ;;  %438 = vmatpush.bf16.msra.mxu1 %v919_v28 }
  0x12   : > { %v1052_v14 = vld [vmem:[%s1001_s28 + $0x30] sm:$0xff]  ;;  %v1055_v15 = vld [vmem:[%s1001_s28 + $0x38] sm:$0xff]  ;;  %v250_v17 = vpack.c.bf16 %v1049_v13, %v1046_v12  ;;  %v1079_v19 = vld [vmem:[%s1001_s28 + $0x68] sm:$0xff]  ;;  %924 = vmatpush.bf16.msra.mxu3 %v919_v28 }
  0x13   : > { %891 = vmatmul.msk.bf16.vlgmr.msra.gmra.mxu0 %vm273_vm0, %v245_v5  ;;  %895 = vmatmul.msk.bf16.vlgmr.msra.gmra.mxu2 %vm273_vm0, %v249_v8  ;;  %v251_v21 = vpack.c.bf16 %v1079_v19, %v1076_v18  ;;  %v1091_v22 = vld [vmem:[%s1001_s28 + $0x70] sm:$0xff]  ;;  %v1097_v23 = vld [vmem:[%s1001_s28 + $0x78] sm:$0xff]  ;;  %v248_v24 = vpack.c.bf16 %v1055_v15, %v1052_v14 }
  0x14   : > { %v252_v25 = vpack.c.bf16 %v1097_v23, %v1091_v22 }
  0x17   : > { %502 = vrot.lane.b32.xlu1 %v1034_v10, %s946_s29  ;;  %498 = vrot.lane.b32.xlu0 %v1010_v4, %s946_s29 }
  0x19   : > { %506 = vrot.lane.b32.xlu2 %v1041_v11, %s946_s29 }
  0x1f   : > { %508 = vrot.lane.b32.xlu0 %v1052_v14, %s946_s29  ;;  %510 = vrot.lane.b32.xlu1 %v1055_v15, %s946_s29 }
  0x21   : > { %512 = vrot.lane.b32.xlu2 %v1019_v6, %s946_s29 }
  0x23   : > { %892 = vmatmul.msk.bf16.gmra.mxu0 %vm273_vm0, %v246_v16  ;;  %896 = vmatmul.msk.bf16.gmra.mxu2 %vm273_vm0, %v250_v17 }
  0x27   : > { %514 = vrot.lane.b32.xlu0 %v1022_v7, %s946_s29  ;;  %516 = vrot.lane.b32.xlu1 %v1046_v12, %s946_s29 }
  0x29   : > { %518 = vrot.lane.b32.xlu2 %v1049_v13, %s946_s29 }
  0x2f   : > { %520 = vrot.lane.b32.xlu0 %v1076_v18, %s946_s29  ;;  %522 = vrot.lane.b32.xlu1 %v1079_v19, %s946_s29 }
  0x31   : > { %524 = vrot.lane.b32.xlu2 %v1091_v22, %s946_s29 }
  0x33   : > { %893 = vmatmul.msk.bf16.gmra.mxu0 %vm273_vm0, %v247_v20  ;;  %897 = vmatmul.msk.bf16.gmra.mxu2 %vm273_vm0, %v251_v21 }
  0x37   : > { %526 = vrot.lane.b32.xlu0 %v1097_v23, %s946_s29  ;;  %644 = vrot.lane.b32.xlu1 %v1004_v2, %s947_s30 }
  0x39   : > { %640 = vrot.lane.b32.xlu2 %v1007_v3, %s947_s30 }
  0x3f   : > { %642 = vrot.lane.b32.xlu0 %v1010_v4, %s947_s30  ;;  %650 = vrot.lane.b32.xlu1 %v1041_v11, %s947_s30 }
  0x41   : > { %646 = vrot.lane.b32.xlu2 %v1034_v10, %s947_s30 }
  0x43   : > { %894 = vmatmul.msk.bf16.gmra.mxu0 %vm273_vm0, %v248_v24  ;;  %898 = vmatmul.msk.bf16.gmra.mxu2 %vm273_vm0, %v252_v25 }
  0x47   : > { %648 = vrot.lane.b32.xlu0 %v1028_v9, %s947_s30  ;;  %656 = vrot.lane.b32.xlu1 %v1019_v6, %s947_s30 }
  0x49   : > { %652 = vrot.lane.b32.xlu2 %v1052_v14, %s947_s30 }
  0x4f   : > { %654 = vrot.lane.b32.xlu0 %v1055_v15, %s947_s30  ;;  %662 = vrot.lane.b32.xlu1 %v1049_v13, %s947_s30 }
  0x51   : > { %658 = vrot.lane.b32.xlu2 %v1022_v7, %s947_s30 }
  0x57   : > { %660 = vrot.lane.b32.xlu0 %v1046_v12, %s947_s30 }
  0x59   : > { %664 = vrot.lane.b32.xlu2 %v1076_v18, %s947_s30 }
  0x6b   : > { %v505_v26 = vpop.permute.xlu2 %504 }
  0x6c   : > { %v1175_v47 = vadd.f32 %v505_v26, %v1028_v9 }
  0x6e   : > { %v564_v55 = vsub.f32 1.0, %v1175_v47 }
  0x73   : > { %v507_v29 = vpop.permute.xlu2 %506 }
  0x74   : > { %v1154_v36 = vadd.f32 %v507_v29, %v1041_v11 }
  0x76   : > { %v565_v40 = vsub.f32 1.0, %v1154_v36 }
  0x7b   : > { %v513_v37 = vpop.permute.xlu2 %512 }
  0x7c   : > { %v1172_v46 = vadd.f32 %v513_v37, %v1019_v6 }
  0x7e   : > { %v568_v53 = vsub.f32 1.0, %v1172_v46 }
  0x81   : > { %v501_v30 = vpop.permute.xlu1 %500  ;;  %v497_v31 = vpop.permute.xlu0 %496 }
  0x82   : > { %v1140_v32 = vadd.f32 %v501_v30, %v1004_v2  ;;  %v1143_v33 = vadd.f32 %v497_v31, %v1007_v3 }
  0x83   : > { %v519_v49 = vpop.permute.xlu2 %518 }
  0x84   : > { %v562_v34 = vsub.f32 1.0, %v1140_v32  ;;  %v560_v35 = vsub.f32 1.0, %v1143_v33  ;;  %v1199_v60 = vadd.f32 %v519_v49, %v1049_v13 }
  0x86   : > { %596 = vrot.lane.b32.xlu0 %v562_v34, %s948_s10  ;;  %592 = vrot.lane.b32.xlu1 %v560_v35, %s948_s10  ;;  %v571_v3 = vsub.f32 1.0, %v1199_v60 }
  0x89   : > { %v503_v38 = vpop.permute.xlu1 %502  ;;  %v499_v39 = vpop.permute.xlu0 %498 }
  0x8a   : > { %v1158_v41 = vadd.f32 %v503_v38, %v1034_v10  ;;  %v1161_v42 = vadd.f32 %v499_v39, %v1010_v4 }
  0x8b   : > { %v525_v9 = vpop.permute.xlu2 %524 }
  0x8c   : > { %v563_v43 = vsub.f32 1.0, %v1158_v41  ;;  %v561_v44 = vsub.f32 1.0, %v1161_v42  ;;  %v1223_v16 = vadd.f32 %v525_v9, %v1091_v22 }
  0x8e   : > { %602 = vrot.lane.b32.xlu0 %v565_v40, %s948_s10  ;;  %598 = vrot.lane.b32.xlu1 %v563_v43, %s948_s10  ;;  %v574_v27 = vsub.f32 1.0, %v1223_v16 }
  0x8f   : > { %594 = vrot.lane.b32.xlu2 %v561_v44, %s948_s10 }
  0x90   : > { %v307_v45 = vpop.f32.mrf.mxu0 }
  0x91   : > { %v308_v50 = vadd.f32 %v1183_v48, %v307_v45  ;;  %v509_v51 = vpop.permute.xlu0 %508  ;;  %v511_v52 = vpop.permute.xlu1 %510 }
  0x92   : > { %v1188_v54 = vadd.f32 %v509_v51, %v1052_v14  ;;  %v1206_v62 = vadd.f32 %v511_v52, %v1055_v15 }
  0x93   : > { %v347_v57 = vmul.f32 0.01, %v308_v50 }
  0x94   : > { %v566_v56 = vsub.f32 1.0, %v1188_v54  ;;  %v567_v8 = vsub.f32 1.0, %v1206_v62 }
  0x95   : > { %v363_v63 = vmax.f32 %v308_v50, %v347_v57 }
  0x96   : > { %v327_v58 = vpop.f32.mrf.mxu2  ;;  %608 = vrot.lane.b32.xlu0 %v568_v53, %s948_s10  ;;  %604 = vrot.lane.b32.xlu1 %v566_v56, %s948_s10 }
  0x97   : > { %600 = vrot.lane.b32.xlu2 %v564_v55, %s948_s10  ;;  %v328_v2 = vadd.f32 %v1183_v48, %v327_v58 }
  0x98   : > { %v309_v59 = vpop.f32.mrf.mxu0 }
  0x99   : > { %v310_v61 = vadd.f32 %v1183_v48, %v309_v59  ;;  %v515_v1 = vpop.permute.xlu0 %514  ;;  %v517_v5 = vpop.permute.xlu1 %516  ;;  %v355_v14 = vmul.f32 0.01, %v328_v2 }
  0x9a   : > { %v1211_v4 = vadd.f32 %v515_v1, %v1022_v7  ;;  %v1230_v17 = vadd.f32 %v517_v5, %v1046_v12 }
  0x9b   : > { %v348_v0 = vmul.f32 0.01, %v310_v61  ;;  %v371_v25 = vmax.f32 %v328_v2, %v355_v14 }
  0x9c   : > { %v569_v10 = vsub.f32 1.0, %v1211_v4  ;;  %v570_v29 = vsub.f32 1.0, %v1230_v17 }
  0x9d   : > { %v364_v6 = vmax.f32 %v310_v61, %v348_v0 }
  0x9e   : > { %v329_v11 = vpop.f32.mrf.mxu2  ;;  %614 = vrot.lane.b32.xlu0 %v571_v3, %s948_s10  ;;  %610 = vrot.lane.b32.xlu1 %v569_v10, %s948_s10 }
  0x9f   : > { %v379_v13 = vpack.c.bf16 %v364_v6, %v363_v63  ;;  %v330_v15 = vadd.f32 %v1183_v48, %v329_v11  ;;  %606 = vrot.lane.b32.xlu2 %v567_v8, %s948_s10 }
  0xa0   : > { %v312_v7 = vpop.f32.mrf.mxu0 }
  0xa1   : > { %907 = vmatmul.msk.bf16.vlgmr.msra.gmra.mxu1 %vm273_vm0, %v379_v13  ;;  %v356_v20 = vmul.f32 0.01, %v330_v15  ;;  %v313_v21 = vadd.f32 %v1183_v48, %v312_v7  ;;  %v521_v24 = vpop.permute.xlu0 %520  ;;  %v523_v37 = vpop.permute.xlu1 %522 }
  0xa2   : > { %v1235_v28 = vadd.f32 %v521_v24, %v1076_v18  ;;  %v1251_v45 = vadd.f32 %v523_v37, %v1079_v19 }
  0xa3   : > { %v372_v26 = vmax.f32 %v330_v15, %v356_v20  ;;  %v349_v38 = vmul.f32 0.01, %v313_v21 }
  0xa4   : > { %v572_v30 = vsub.f32 1.0, %v1235_v28  ;;  %v573_v59 = vsub.f32 1.0, %v1251_v45 }
  0xa5   : > { %v383_v31 = vpack.c.bf16 %v372_v26, %v371_v25  ;;  %v365_v49 = vmax.f32 %v313_v21, %v349_v38 }
  0xa6   : > { %v332_v12 = vpop.f32.mrf.mxu2  ;;  %620 = vrot.lane.b32.xlu0 %v574_v27, %s948_s10  ;;  %616 = vrot.lane.b32.xlu1 %v572_v30, %s948_s10 }
  0xa7   : > { %911 = vmatmul.msk.bf16.vlgmr.msra.gmra.mxu3 %vm273_vm0, %v383_v31  ;;  %612 = vrot.lane.b32.xlu2 %v570_v29, %s948_s10  ;;  %v333_v52 = vadd.f32 %v1183_v48, %v332_v12 }
  0xa8   : > { %v314_v39 = vpop.f32.mrf.mxu0 }
  0xa9   : > { %v315_v18 = vadd.f32 %v1183_v48, %v314_v39  ;;  %v527_v51 = vpop.permute.xlu0 %526  ;;  %v357_v1 = vmul.f32 0.01, %v333_v52 }
  0xaa   : > { %v1255_v57 = vadd.f32 %v527_v51, %v1097_v23 }
  0xab   : > { %v350_v50 = vmul.f32 0.01, %v315_v18  ;;  %v373_v11 = vmax.f32 %v333_v52, %v357_v1 }
  0xac   : > { %v575_v61 = vsub.f32 1.0, %v1255_v57 }
  0xad   : > { %v366_v58 = vmax.f32 %v315_v18, %v350_v50  ;;  %v641_v18 = vpop.permute.xlu2 %640 }
  0xae   : > { %v334_v63 = vpop.f32.mrf.mxu2  ;;  %666 = vrot.lane.b32.xlu0 %v1079_v19, %s947_s30  ;;  %622 = vrot.lane.b32.xlu1 %v575_v61, %s948_s10 }
  0xaf   : > { %v380_v0 = vpack.c.bf16 %v366_v58, %v365_v49  ;;  %v335_v2 = vadd.f32 %v1183_v48, %v334_v63  ;;  %618 = vrot.lane.b32.xlu2 %v573_v59, %s948_s10 }
  0xb0   : > { %v317_v5 = vpop.f32.mrf.mxu0 }
  0xb1   : > { %v358_v6 = vmul.f32 0.01, %v335_v2  ;;  %908 = vmatmul.msk.bf16.gmra.mxu1 %vm273_vm0, %v380_v0  ;;  %v318_v9 = vadd.f32 %v1183_v48, %v317_v5 }
  0xb3   : > { %v374_v13 = vmax.f32 %v335_v2, %v358_v6  ;;  %v351_v15 = vmul.f32 0.01, %v318_v9 }
  0xb5   : > { %v384_v14 = vpack.c.bf16 %v374_v13, %v373_v11  ;;  %v367_v21 = vmax.f32 %v318_v9, %v351_v15  ;;  %v1282_v1 = vpop.permute.xlu2 %646 }
  0xb6   : > { %v337_v7 = vpop.f32.mrf.mxu2  ;;  %668 = vrot.lane.b32.xlu1 %v1091_v22, %s947_s30 }
  0xb7   : > { %912 = vmatmul.msk.bf16.gmra.mxu3 %vm273_vm0, %v384_v14  ;;  %670 = vrot.lane.b32.xlu2 %v1097_v23, %s947_s30  ;;  %v338_v25 = vadd.f32 %v1183_v48, %v337_v7 }
  0xb8   : > { %v319_v19 = vpop.f32.mrf.mxu0 }
  0xb9   : > { %v320_v20 = vadd.f32 %v1183_v48, %v319_v19  ;;  %v359_v38 = vmul.f32 0.01, %v338_v25  ;;  %v645_v19 = vpop.permute.xlu1 %644 }
  0xbb   : > { %v352_v24 = vmul.f32 0.01, %v320_v20  ;;  %v375_v50 = vmax.f32 %v338_v25, %v359_v38 }
  0xbd   : > { %v368_v26 = vmax.f32 %v320_v20, %v352_v24  ;;  %v1287_v24 = vpop.permute.xlu2 %652 }
  0xbe   : > { %v339_v31 = vpop.f32.mrf.mxu2 }
  0xbf   : > { %v381_v37 = vpack.c.bf16 %v368_v26, %v367_v21  ;;  %v340_v12 = vadd.f32 %v1183_v48, %v339_v31 }
  0xc0   : > { %v322_v39 = vpop.f32.mrf.mxu0 }
  0xc1   : > { %v360_v49 = vmul.f32 0.01, %v340_v12  ;;  %909 = vmatmul.msk.bf16.gmra.mxu1 %vm273_vm0, %v381_v37  ;;  %v323_v22 = vadd.f32 %v1183_v48, %v322_v39  ;;  %v1290_v26 = vpop.permute.xlu1 %650  ;;  %v643_v37 = vpop.permute.xlu0 %642 }
  0xc3   : > { %v376_v51 = vmax.f32 %v340_v12, %v360_v49  ;;  %v353_v52 = vmul.f32 0.01, %v323_v22 }
  0xc5   : > { %v385_v23 = vpack.c.bf16 %v376_v51, %v375_v50  ;;  %v369_v2 = vmax.f32 %v323_v22, %v353_v52  ;;  %v659_v31 = vpop.permute.xlu2 %658 }
  0xc6   : > { %v342_v58 = vpop.f32.mrf.mxu2 }
  0xc7   : > { %913 = vmatmul.msk.bf16.gmra.mxu3 %vm273_vm0, %v385_v23  ;;  %v343_v6 = vadd.f32 %v1183_v48, %v342_v58 }
  0xc8   : > { %v324_v63 = vpop.f32.mrf.mxu0 }
  0xc9   : > { %v325_v0 = vadd.f32 %v1183_v48, %v324_v63  ;;  %v361_v14 = vmul.f32 0.01, %v343_v6  ;;  %v657_v38 = vpop.permute.xlu1 %656  ;;  %v1294_v39 = vpop.permute.xlu0 %648 }
  0xcb   : > { %v354_v5 = vmul.f32 0.01, %v325_v0  ;;  %v377_v20 = vmax.f32 %v343_v6, %v361_v14 }
  0xcd   : > { %v370_v9 = vmax.f32 %v325_v0, %v354_v5  ;;  %v1292_v12 = vpop.permute.xlu2 %664 }
  0xce   : > { %v344_v11 = vpop.f32.mrf.mxu2 }
  0xcf   : > { %v382_v13 = vpack.c.bf16 %v370_v9, %v369_v2  ;;  %v345_v15 = vadd.f32 %v1183_v48, %v344_v11 }
  0xd1   : > { %v362_v7 = vmul.f32 0.01, %v345_v15  ;;  %910 = vmatmul.msk.bf16.gmra.mxu1 %vm273_vm0, %v382_v13  ;;  %v1296_v48 = vpop.permute.xlu1 %662  ;;  %v1298_v22 = vpop.permute.xlu0 %654 }
  0xd3   : > { %v378_v21 = vmax.f32 %v345_v15, %v362_v7  ;;  %v1322_v7 = vld [vmem:[%s1463_s4] ss:$0 sm:$0xff] }
  0xd5   : > { %v386_v25 = vpack.c.bf16 %v378_v21, %v377_v20 }
  0xd7   : > { %914 = vmatmul.msk.bf16.gmra.mxu3 %vm273_vm0, %v386_v25 }
  0xd9   : > { %v1302_v23 = vpop.permute.xlu0 %660 }
  0xe9   : > { %v595_v49 = vpop.permute.xlu2 %594 }
  0xea   : > { %v690_v33 = vsel %vm688_vm1, %v561_v44, %v595_v49 }
  0xf1   : > { %v1300_v51 = vpop.permute.xlu2 %600 }
  0xf2   : > { %v693_v17 = vsel %vm688_vm1, %v564_v55, %v1300_v51 }
  0xf8   : > { %v593_v50 = vpop.permute.xlu1 %592  ;;  %v597_v63 = vpop.permute.xlu0 %596 }
  0xf9   : > { %v1304_v58 = vpop.permute.xlu2 %606  ;;  %v689_v6 = vsel %vm688_vm1, %v560_v35, %v593_v50 }
  0xfa   : > { %v705_v11 = vsel %vm273_vm0, %v689_v6, %v641_v18  ;;  %v706_v18 = vsel %vm273_vm0, %v690_v33, %v643_v37 }
  0xfb   : > { %v722_v14 = vsel %vm721_vm2, %v705_v11, 0.0  ;;  %v723_v44 = vsel %vm721_vm2, %v706_v18, 0.0 }
  0xfc   : > { %v754_v35 = vsub.f32 1.0, %v722_v14 }
  0xfe   : > { %v770_v11 = vmul.f32 -100.0, %v754_v35  ;;  %v755_v35 = vsub.f32 1.0, %v723_v44 }
 0x100   : > { %v599_v52 = vpop.permute.xlu1 %598  ;;  %v1311_v9 = vpop.permute.xlu0 %602 }
 0x101   : > { %v613_v2 = vpop.permute.xlu2 %612  ;;  %v694_v60 = vsel %vm688_vm1, %v565_v40, %v1311_v9 }
 0x102   : > { %v699_v41 = vsel %vm688_vm1, %v570_v29, %v613_v2 }
 0x108   : > { %v1306_v0 = vpop.permute.xlu1 %604  ;;  %v609_v20 = vpop.permute.xlu0 %608 }
 0x109   : > { %v1314_v13 = vpop.permute.xlu2 %618  ;;  %v697_v50 = vsel %vm688_vm1, %v568_v53, %v609_v20  ;;  %v691_v53 = vsel %vm688_vm1, %v562_v34, %v597_v63  ;;  %v695_v28 = vsel %vm688_vm1, %v566_v56, %v1306_v0 }
 0x10a   : > { %v713_v33 = vsel %vm273_vm0, %v697_v50, %v657_v38  ;;  %v707_v57 = vsel %vm273_vm0, %v691_v53, %v645_v19  ;;  %v692_v19 = vsel %vm688_vm1, %v563_v43, %v599_v52  ;;  %v702_v56 = vsel %vm688_vm1, %v573_v59, %v1314_v13 }
 0x10b   : > { %v730_v38 = vsel %vm721_vm2, %v713_v33, 0.0 }
 0x10c   : > { %v762_v63 = vsub.f32 1.0, %v730_v38 }
 0x110   : > { %v611_v5 = vpop.permute.xlu1 %610  ;;  %v615_v29 = vpop.permute.xlu0 %614 }
 0x111   : > { %v671_v42 = vpop.permute.xlu2 %670  ;;  %v698_v32 = vsel %vm688_vm1, %v569_v10, %v611_v5  ;;  %v700_v47 = vsel %vm688_vm1, %v571_v3, %v615_v29 }
 0x118   : > { %v1317_v15 = vpop.permute.xlu1 %616 }
 0x119   : > { %v701_v36 = vsel %vm688_vm1, %v572_v30, %v1317_v15 }
 0x11e   : > { %v440_v21 = vpop.f32.mrf.mxu1 }
 0x11f   : > { %v441_v25 = vadd.f32 %v1322_v7, %v440_v21 }
 0x120   : > { %v623_v37 = vpop.permute.xlu1 %622 }
 0x121   : > { %v738_v6 = vmul.f32 %v722_v14, %v441_v25  ;;  %v704_v46 = vsel %vm688_vm1, %v575_v61, %v623_v37  ;;  %v771_v61 = vmul.f32 -100.0, %v755_v35  ;;  %v708_v37 = vsel %vm273_vm0, %v692_v19, %v1282_v1 }
 0x122   : > { %v720_v14 = vsel %vm273_vm0, %v704_v46, %v671_v42  ;;  %v715_v35 = vsel %vm273_vm0, %v699_v41, %v1302_v23  ;;  %v709_v23 = vsel %vm273_vm0, %v693_v17, %v1294_v39  ;;  %v717_v41 = vsel %vm273_vm0, %v701_v36, %v1292_v12 }
 0x123   : > { %v786_v49 = vadd.f32 %v770_v11, %v738_v6  ;;  %v1350_v20 = vsel %vm721_vm2, %v720_v14, 0.0  ;;  %v724_v6 = vsel %vm721_vm2, %v707_v57, 0.0  ;;  %v714_v11 = vsel %vm273_vm0, %v698_v32, %v659_v31 }
 0x124   : > { %v756_v10 = vsub.f32 1.0, %v724_v6  ;;  %v725_v14 = vsel %vm721_vm2, %v708_v37, 0.0  ;;  %v732_v32 = vsel %vm721_vm2, %v715_v35, 0.0 }
 0x125   : > { %802 = vst [vmem:[%s1337_s17] sm:$0xff] %v786_v49  ;;  %v778_v49 = vmul.f32 -100.0, %v762_v63  ;;  %v764_v63 = vsub.f32 1.0, %v732_v32 }
 0x126   : > { %v442_v21 = vpop.f32.mrf.mxu1  ;;  %v772_v52 = vmul.f32 -100.0, %v756_v10 }
 0x127   : > { %v443_v18 = vadd.f32 %v1322_v7, %v442_v21 }
 0x129   : > { %v739_v34 = vmul.f32 %v723_v44, %v443_v18  ;;  %v731_v44 = vsel %vm721_vm2, %v714_v11, 0.0 }
 0x12a   : > { %v460_v50 = vpop.f32.mrf.mxu3  ;;  %v763_v46 = vsub.f32 1.0, %v731_v44 }
 0x12b   : > { %v787_v25 = vadd.f32 %v771_v61, %v739_v34  ;;  %v461_v42 = vadd.f32 %v1322_v7, %v460_v50  ;;  %v726_v50 = vsel %vm721_vm2, %v709_v23, 0.0 }
 0x12c   : > { %v779_v18 = vmul.f32 -100.0, %v763_v46  ;;  %v758_v19 = vsub.f32 1.0, %v726_v50 }
 0x12d   : > { %803 = vst [vmem:[%s1337_s17 + $0x8] sm:$0xff] %v787_v25  ;;  %v746_v4 = vmul.f32 %v730_v38, %v461_v42  ;;  %v757_v38 = vsub.f32 1.0, %v725_v14  ;;  %v780_v42 = vmul.f32 -100.0, %v764_v63 }
 0x12e   : > { %v445_v5 = vpop.f32.mrf.mxu1  ;;  %v774_v9 = vmul.f32 -100.0, %v758_v19 }
 0x12f   : > { %v794_v33 = vadd.f32 %v778_v49, %v746_v4  ;;  %v446_v31 = vadd.f32 %v1322_v7, %v445_v5  ;;  %v773_v51 = vmul.f32 -100.0, %v757_v38  ;;  %v621_v4 = vpop.permute.xlu0 %620  ;;  %v696_v38 = vsel %vm688_vm1, %v567_v8, %v1304_v58 }
 0x130   : > { %v712_v23 = vsel %vm273_vm0, %v696_v38, %v1298_v22  ;;  %v703_v8 = vsel %vm688_vm1, %v574_v27, %v621_v4 }
 0x131   : > { %810 = vst [vmem:[%s1337_s17 + $0x40] sm:$0xff] %v794_v33  ;;  %v740_v43 = vmul.f32 %v724_v6, %v446_v31  ;;  %v716_v6 = vsel %vm273_vm0, %v700_v47, %v1296_v48  ;;  %v710_v48 = vsel %vm273_vm0, %v694_v60, %v1290_v26  ;;  %v669_v47 = vpop.permute.xlu1 %668  ;;  %v729_v63 = vsel %vm721_vm2, %v712_v23, 0.0 }
 0x132   : > { %v462_v53 = vpop.f32.mrf.mxu3  ;;  %v733_v10 = vsel %vm721_vm2, %v716_v6, 0.0  ;;  %v727_v31 = vsel %vm721_vm2, %v710_v48, 0.0 }
 0x133   : > { %v788_v21 = vadd.f32 %v772_v52, %v740_v43  ;;  %v463_v1 = vadd.f32 %v1322_v7, %v462_v53  ;;  %v765_v37 = vsub.f32 1.0, %v733_v10  ;;  %v759_v52 = vsub.f32 1.0, %v727_v31 }
 0x134   : > { %v734_v53 = vsel %vm721_vm2, %v717_v41, 0.0 }
 0x135   : > { %804 = vst [vmem:[%s1337_s17 + $0x10] sm:$0xff] %v788_v21  ;;  %v747_v2 = vmul.f32 %v731_v44, %v463_v1  ;;  %v781_v15 = vmul.f32 -100.0, %v765_v37  ;;  %v775_v54 = vmul.f32 -100.0, %v759_v52  ;;  %v766_v17 = vsub.f32 1.0, %v734_v53 }
 0x136   : > { %v447_v57 = vpop.f32.mrf.mxu1 }
 0x137   : > { %v795_v34 = vadd.f32 %v779_v18, %v747_v2  ;;  %v448_v61 = vadd.f32 %v1322_v7, %v447_v57  ;;  %v667_v21 = vpop.permute.xlu0 %666 }
 0x138   : > { %v718_v2 = vsel %vm273_vm0, %v702_v56, %v667_v21 }
 0x139   : > { %811 = vst [vmem:[%s1337_s17 + $0x48] sm:$0xff] %v795_v34  ;;  %v741_v55 = vmul.f32 %v725_v14, %v448_v61  ;;  %v711_v14 = vsel %vm273_vm0, %v695_v28, %v1287_v24  ;;  %v735_v59 = vsel %vm721_vm2, %v718_v2, 0.0 }
 0x13a   : > { %v465_v25 = vpop.f32.mrf.mxu3  ;;  %v728_v29 = vsel %vm721_vm2, %v711_v14, 0.0 }
 0x13b   : > { %v789_v11 = vadd.f32 %v773_v51, %v741_v55  ;;  %v466_v39 = vadd.f32 %v1322_v7, %v465_v25  ;;  %v760_v45 = vsub.f32 1.0, %v728_v29  ;;  %v767_v55 = vsub.f32 1.0, %v735_v59 }
 0x13c   : > { %v719_v25 = vsel %vm273_vm0, %v703_v8, %v669_v47 }
 0x13d   : > { %805 = vst [vmem:[%s1337_s17 + $0x18] sm:$0xff] %v789_v11  ;;  %v748_v3 = vmul.f32 %v732_v32, %v466_v39  ;;  %v782_v32 = vmul.f32 -100.0, %v766_v17  ;;  %v776_v51 = vmul.f32 -100.0, %v760_v45  ;;  %v783_v6 = vmul.f32 -100.0, %v767_v55 }
 0x13e   : > { %v450_v49 = vpop.f32.mrf.mxu1  ;;  %v761_v39 = vsub.f32 1.0, %v729_v63  ;;  %v736_v60 = vsel %vm721_vm2, %v719_v25, 0.0 }
 0x13f   : > { %v796_v5 = vadd.f32 %v780_v42, %v748_v3  ;;  %v451_v44 = vadd.f32 %v1322_v7, %v450_v49  ;;  %v768_v42 = vsub.f32 1.0, %v736_v60 }
 0x140   : > { %v777_v4 = vmul.f32 -100.0, %v761_v39 }
 0x141   : > { %812 = vst [vmem:[%s1337_s17 + $0x50] sm:$0xff] %v796_v5  ;;  %v742_v40 = vmul.f32 %v726_v50, %v451_v44  ;;  %v784_v5 = vmul.f32 -100.0, %v768_v42 }
 0x142   : > { %v467_v33 = vpop.f32.mrf.mxu3 }
 0x143   : > { %v790_v26 = vadd.f32 %v774_v9, %v742_v40  ;;  %v468_v43 = vadd.f32 %v1322_v7, %v467_v33  ;;  %v769_v40 = vsub.f32 1.0, %v1350_v20 }
 0x145   : > { %806 = vst [vmem:[%s1337_s17 + $0x20] sm:$0xff] %v790_v26  ;;  %v749_v30 = vmul.f32 %v733_v10, %v468_v43  ;;  %v785_v33 = vmul.f32 -100.0, %v769_v40 }
 0x146   : > { %v452_v46 = vpop.f32.mrf.mxu1 }
 0x147   : > { %v797_v12 = vadd.f32 %v781_v15, %v749_v30  ;;  %v453_v35 = vadd.f32 %v1322_v7, %v452_v46 }
 0x149   : > { %813 = vst [vmem:[%s1337_s17 + $0x58] sm:$0xff] %v797_v12  ;;  %v743_v1 = vmul.f32 %v727_v31, %v453_v35 }
 0x14a   : > { %v470_v0 = vpop.f32.mrf.mxu3 }
 0x14b   : > { %v791_v24 = vadd.f32 %v775_v54, %v743_v1  ;;  %v471_v18 = vadd.f32 %v1322_v7, %v470_v0 }
 0x14d   : > { %807 = vst [vmem:[%s1337_s17 + $0x28] sm:$0xff] %v791_v24  ;;  %v750_v57 = vmul.f32 %v734_v53, %v471_v18 }
 0x14e   : > { %v455_v13 = vpop.f32.mrf.mxu1 }
 0x14f   : > { %v798_v34 = vadd.f32 %v782_v32, %v750_v57  ;;  %v456_v61 = vadd.f32 %v1322_v7, %v455_v13 }
 0x151   : > { %814 = vst [vmem:[%s1337_s17 + $0x60] sm:$0xff] %v798_v34  ;;  %v744_v62 = vmul.f32 %v728_v29, %v456_v61 }
 0x152   : > { %v472_v58 = vpop.f32.mrf.mxu3 }
 0x153   : > { %v792_v50 = vadd.f32 %v776_v51, %v744_v62  ;;  %v473_v22 = vadd.f32 %v1322_v7, %v472_v58 }
 0x155   : > { %808 = vst [vmem:[%s1337_s17 + $0x30] sm:$0xff] %v792_v50  ;;  %v751_v11 = vmul.f32 %v735_v59, %v473_v22 }
 0x156   : > { %v457_v16 = vpop.f32.mrf.mxu1 }
 0x157   : > { %v799_v3 = vadd.f32 %v783_v6, %v751_v11  ;;  %v458_v27 = vadd.f32 %v1322_v7, %v457_v16 }
 0x159   : > { %815 = vst [vmem:[%s1337_s17 + $0x68] sm:$0xff] %v799_v3  ;;  %v745_v19 = vmul.f32 %v729_v63, %v458_v27 }
 0x15a   : > { %v475_v49 = vpop.f32.mrf.mxu3 }
 0x15b   : > { %v793_v10 = vadd.f32 %v777_v4, %v745_v19  ;;  %v476_v48 = vadd.f32 %v1322_v7, %v475_v49 }
 0x15d   : > { %809 = vst [vmem:[%s1337_s17 + $0x38] sm:$0xff] %v793_v10  ;;  %v752_v44 = vmul.f32 %v736_v60, %v476_v48 }
 0x15f   : > { %v800_v36 = vadd.f32 %v784_v5, %v752_v44 }
 0x161   : > { %816 = vst [vmem:[%s1337_s17 + $0x70] sm:$0xff] %v800_v36 }
 0x162   : > { %v477_v9 = vpop.f32.mrf.mxu3 }
 0x163   : > { %v478_v37 = vadd.f32 %v1322_v7, %v477_v9 }
 0x165   : > { %v753_v31 = vmul.f32 %v1350_v20, %v478_v37 }
 0x167   : > { %v801_v41 = vadd.f32 %v785_v33, %v753_v31 }
 0x169   : > { %817 = vst [vmem:[%s1337_s17 + $0x78] sm:$0xff] %v801_v41 }
 0x16a PF: > { %s15_s18 = sadd.s32 1, %s944_s18  }
 0x16b   : > { %p12_p4 = scmp.ge.s32.totalorder %s15_s18, 4  }
 0x16d   :  { %14 = sbr.rel (!%p12_p4) target bundleno = 1 (0x1), region = 70 }

</bundles_post_ra>
